<compile_context>
chip_gen: v5e
topology: v5e:2x2
jax: 0.10.0
libtpu: 0.0.40
codegen_flags: <defaults>
</compile_context>

<pallas_src>
import jax
import jax.numpy as jnp
from jax import lax
from jax.experimental import pallas as pl
from jax.experimental.pallas import tpu as pltpu


def _gemm_bias_relu_kernel(p_ref, w_ref, bias_ref, o_ref):
    # p_ref:    (tm, K_pad)        im2col patch rows (zero-padded rows/cols)
    # w_ref:    (K_pad, Cout_pad)  conv weights with BN scale pre-folded (0 on pads)
    # bias_ref: (1, Cout_pad)      beta - mean * scale       (0 on pad lanes)
    # o_ref:    (tm, Cout_pad)     lane-dense output tile
    acc = jnp.dot(p_ref[...], w_ref[...], preferred_element_type=jnp.float32)
    out = acc + bias_ref[...]                                  # folded BN (eval mode)
    o_ref[...] = jnp.maximum(out, 0.0).astype(o_ref.dtype)     # ReLU


def one_conv_block(x_nchw, weight, gamma, beta, running_mean, running_var,
                   eps=1e-5, *, tm=256):
    """Forward pass of OneConvBlock (stride=1).

    x_nchw: (N, Cin, H, W) float32
    weight: (Cout, Cin, 3, 3) float32  (PyTorch conv weight layout)
    returns: (N, Cout, H, W) float32
    """
    N, Cin, H, W = x_nchw.shape
    Cout = weight.shape[0]
    K = 9 * Cin

    LANE = 128
    SUB = 8
    Cout_pad = ((Cout + LANE - 1) // LANE) * LANE      # lane-dense output
    K_pad = ((K + SUB - 1) // SUB) * SUB               # sublane-aligned K

    # ---- glue: layout conversion, im2col, padding, BN folding (plain JAX) ----
    x_nhwc = jnp.transpose(x_nchw, (0, 2, 3, 1))                  # (N,H,W,Cin)
    x_padded = jnp.pad(x_nhwc, ((0, 0), (1, 1), (1, 1), (0, 0)))  # (N,H+2,W+2,Cin)
    # im2col: stack the 9 taps along channels -> (N*H*W, 9*Cin)
    taps = [x_padded[:, kh:kh + H, kw:kw + W, :]
            for kh in range(3) for kw in range(3)]
    patches = jnp.concatenate(taps, axis=-1).reshape(N * H * W, K)

    M = N * H * W
    tm = min(tm, ((M + SUB - 1) // SUB) * SUB)         # don't over-tile tiny inputs
    M_pad = ((M + tm - 1) // tm) * tm
    patches = jnp.pad(patches, ((0, M_pad - M), (0, K_pad - K))).astype(jnp.float32)

    # BN folding: scale goes into the weights, bias stays as the epilogue add.
    scale = gamma / jnp.sqrt(running_var + eps)                   # (Cout,)
    bias = beta - running_mean * scale                            # (Cout,)

    # (Cout,Cin,3,3) -> (kh,kw,Cin,Cout) -> (9*Cin, Cout), matching tap order,
    # then scale columns by the per-channel BN scale.
    w_mat = jnp.transpose(weight, (2, 3, 1, 0)).reshape(K, Cout)
    w_mat = w_mat * scale.reshape(1, Cout)
    w_mat = jnp.pad(w_mat, ((0, K_pad - K), (0, Cout_pad - Cout))).astype(jnp.float32)

    bias2d = jnp.pad(bias.reshape(1, Cout),
                     ((0, 0), (0, Cout_pad - Cout))).astype(jnp.float32)

    out_flat = pl.pallas_call(
        _gemm_bias_relu_kernel,
        out_shape=jax.ShapeDtypeStruct((M_pad, Cout_pad), jnp.float32),
        grid_spec=pltpu.PrefetchScalarGridSpec(
            num_scalar_prefetch=0,
            grid=(M_pad // tm,),
            in_specs=[
                pl.BlockSpec((tm, K_pad), lambda i: (i, 0)),
                pl.BlockSpec((K_pad, Cout_pad), lambda i: (0, 0)),
                pl.BlockSpec((1, Cout_pad), lambda i: (0, 0)),
            ],
            out_specs=pl.BlockSpec((tm, Cout_pad), lambda i: (i, 0)),
        ),
        compiler_params=pltpu.CompilerParams(
            dimension_semantics=("parallel",)),
    )(patches, w_mat, bias2d)

    out = out_flat[:M, :Cout].reshape(N, H, W, Cout)   # drop pad rows / pad lanes
    return jnp.transpose(out, (0, 3, 1, 2))            # back to NCHW


def _reference(x_nchw, weight, gamma, beta, running_mean, running_var, eps=1e-5):
    """Pure-JAX reference (NCHW conv + eval-mode BN + ReLU)."""
    conv = lax.conv_general_dilated(
        x_nchw, weight, window_strides=(1, 1), padding=((1, 1), (1, 1)),
        dimension_numbers=("NCHW", "OIHW", "NCHW"))
    scale = (gamma / jnp.sqrt(running_var + eps)).reshape(1, -1, 1, 1)
    bias = (beta - running_mean * gamma / jnp.sqrt(running_var + eps)).reshape(1, -1, 1, 1)
    return jnp.maximum(conv * scale + bias, 0.0)


if __name__ == "__main__":
    key = jax.random.PRNGKey(0)
    k_x, k_w, k_g, k_b, k_m, k_v = jax.random.split(key, 6)

    N, Cin, H, W = 2, 4, 16, 16
    Cout = 8

    x = jax.random.normal(k_x, (N, Cin, H, W), dtype=jnp.float32)
    fan_in = Cin * 3 * 3
    weight = jax.random.normal(k_w, (Cout, Cin, 3, 3), dtype=jnp.float32) / jnp.sqrt(fan_in)
    gamma = 1.0 + 0.1 * jax.random.normal(k_g, (Cout,), dtype=jnp.float32)
    beta = 0.1 * jax.random.normal(k_b, (Cout,), dtype=jnp.float32)
    running_mean = 0.1 * jax.random.normal(k_m, (Cout,), dtype=jnp.float32)
    running_var = jnp.abs(jax.random.normal(k_v, (Cout,), dtype=jnp.float32)) + 0.5

    out = one_conv_block(x, weight, gamma, beta, running_mean, running_var)
    out = jax.block_until_ready(out)

    ref = _reference(x, weight, gamma, beta, running_mean, running_var)
    assert out.shape == (N, Cout, H, W)
    assert jnp.allclose(out, ref, atol=1e-4, rtol=1e-4), "mismatch vs reference"

    print("KERNEL_OK")
</pallas_src>

<mosaic_0001>
module attributes {stable_mosaic.version = 11 : i64} {
  func.func @_gemm_bias_relu_kernel(%arg0: i32, %arg1: memref<256x40xf32, #tpu.memory_space<vmem>>, %arg2: memref<40x128xf32, #tpu.memory_space<vmem>>, %arg3: memref<1x128xf32, #tpu.memory_space<vmem>>, %arg4: memref<256x128xf32, #tpu.memory_space<vmem>>) attributes {dimension_semantics = [#tpu.dimension_semantics<parallel>], iteration_bounds = array<i64: 2>, scalar_prefetch = 0 : i64, scratch_operands = 0 : i64, tpu.core_type = #tpu.core_type<tc>, window_params = [{transform_indices = @transform_0, window_bounds = array<i64: 256, 40>}, {pipeline_mode = #tpu.pipeline_mode<synchronous>, transform_indices = @transform_1, window_bounds = array<i64: 40, 128>}, {pipeline_mode = #tpu.pipeline_mode<synchronous>, transform_indices = @transform_2, window_bounds = array<i64: 1, 128>}, {transform_indices = @transform_3, window_bounds = array<i64: 256, 128>}]} {
    %c0 = arith.constant 0 : index
    %c0_0 = arith.constant 0 : index
    %0 = vector.load %arg1[%c0, %c0_0] : memref<256x40xf32, #tpu.memory_space<vmem>>, vector<256x40xf32>
    %c0_1 = arith.constant 0 : index
    %c0_2 = arith.constant 0 : index
    %1 = vector.load %arg2[%c0_1, %c0_2] : memref<40x128xf32, #tpu.memory_space<vmem>>, vector<40x128xf32>
    %cst = arith.constant dense<0.000000e+00> : vector<256x128xf32>
    %2 = tpu.matmul %0, %1, %cst {dimension_numbers = #tpu.dot_dimension_numbers<[1], [0], [0], [1], [0, 0, 1, 1], [], []>} : vector<256x40xf32>, vector<40x128xf32>, vector<256x128xf32> -> vector<256x128xf32>
    %c0_3 = arith.constant 0 : index
    %c0_4 = arith.constant 0 : index
    %3 = vector.load %arg3[%c0_3, %c0_4] : memref<1x128xf32, #tpu.memory_space<vmem>>, vector<1x128xf32>
    %4 = vector.broadcast %3 : vector<1x128xf32> to vector<256x128xf32>
    %5 = arith.addf %2, %4 : vector<256x128xf32>
    %cst_5 = arith.constant 0.000000e+00 : f32
    %6 = vector.broadcast %cst_5 : f32 to vector<256x128xf32>
    %7 = arith.maximumf %5, %6 : vector<256x128xf32>
    %c0_6 = arith.constant 0 : index
    %c0_7 = arith.constant 0 : index
    %8 = vector.load %arg4[%c0_6, %c0_7] : memref<256x128xf32, #tpu.memory_space<vmem>>, vector<256x128xf32>
    tpu.vector_store %arg4[%c0_6, %c0_7], %7 {strides = array<i32>} : memref<256x128xf32, #tpu.memory_space<vmem>>, vector<256x128xf32>,
    return
  }
  func.func @transform_0(%arg0: i32) -> (i32, i32) {
    %c0_i32 = arith.constant 0 : i32
    %c0_i32_0 = arith.constant 0 : i32
    return %arg0, %c0_i32 : i32, i32
  }
  func.func @transform_1(%arg0: i32) -> (i32, i32) {
    %c0_i32 = arith.constant 0 : i32
    %c0_i32_0 = arith.constant 0 : i32
    %c0_i32_1 = arith.constant 0 : i32
    return %c0_i32, %c0_i32_0 : i32, i32
  }
  func.func @transform_2(%arg0: i32) -> (i32, i32) {
    %c0_i32 = arith.constant 0 : i32
    %c0_i32_0 = arith.constant 0 : i32
    %c0_i32_1 = arith.constant 0 : i32
    return %c0_i32, %c0_i32_0 : i32, i32
  }
  func.func @transform_3(%arg0: i32) -> (i32, i32) {
    %c0_i32 = arith.constant 0 : i32
    %c0_i32_0 = arith.constant 0 : i32
    return %arg0, %c0_i32 : i32, i32
  }
}

</mosaic_0001>

<bundles_post_ra>
// kernel: tpu_custom_call.1
= control target key start
LH: loop header
LB: loop body
LE: loop exit
PB: predicated region body
PF: predicated region fallthrough
CT: control target
= control target key end

     0   :  { %8 = vsyncpa [#allocation3], 0  ;;  %s994_s0 = inlined_call_operand.vmem [shape: f32[512,40], index: 0, kind: input, shape index: {}]   ;;  %s995_s1 = inlined_call_operand.vmem [shape: f32[40,128], index: 1, kind: input, shape index: {}]   ;;  %s996_s2 = inlined_call_operand.vmem [shape: f32[1,128], index: 2, kind: input, shape index: {}]   ;;  %s997_s3 = inlined_call_operand.hbm [shape: f32[512,128], index: 3, kind: output, shape index: {}]  }
   0x1   :  { %10 = vsyncpa [#allocation3 + $0x1], 0  ;;  %s753_s12 = smov 0   ;;  %s755_s13 = smov 0  }
   0x2   :  { %s757_s14 = smov 0   ;;  %s759_s15 = smov 0  }
   0x3 LB: > { %s774_s16 = sadd.s32 4294967295, %s729_s15   ;;  %s565_s17 = sadd.s32 4294967294, %s729_s15   ;;  %s729_s15 = sphi %s759_s15, %s1003_s15   ;;  %s725_s14 = sphi %s757_s14, %s1002_s14   ;;  %s721_s13 = sphi %s755_s13, %s1001_s13   ;;  %s717_s12 = sphi %s753_s12, %s1000_s12  }
   0x4   : > { %s778_s18 = sadd.s32 1, %s729_s15   ;;  %s91_s19 = sadd.s32 1, %s725_s14 }
   0x5   : > { %s88_s20 = ssub.s32 %s729_s15, %s778_s18  ;;  %p101_p0 = scmp.ne.s32.totalorder %s725_s14, %s721_s13 }
   0x6   : > { %p89_p1 = scmp.eq.s32.totalorder %s88_s20, 0  ;;  %p102_p2 = scmp.eq.s32.totalorder %s774_s16, 1 }
   0x7   : > { %p107_p3 = scmp.ne.s32.totalorder %s721_s13, %s717_s12  ;;  %p108_p4 = scmp.eq.s32.totalorder %s565_s17, 1 }
   0x8   : > { %s789_s21 = scalar_select %p89_p1, %s725_s14, %s91_s19  }
   0x9   : > { %p791_p5 = por %p102_p2, %p101_p0  ;;  %p795_p6 = por %p108_p4, %p107_p3 }
   0xa   : > { %p568_p7 = scmp.ge.s32.totalorder %s729_s15, 1  ;;  %p141_p8 = scmp.lt.s32.totalorder %s729_s15, 3 }
   0xc   : > { %p142_p9 = pnand %p568_p7, %p141_p8 }
   0xd   : > { %s570_s28 = sshll.u32 (!%p142_p9), %s774_s16, 5  ;;  %s162_s17 = sand.u32 (!%p142_p9), 1, %s721_s13  }
   0xe   : > { %145 = sbr.rel (%p142_p9) target bundleno = 226 (0xe2), region = 32  ;;  %p166_p10 = scmp.lt.s32.totalorder (!%p142_p9), %s570_s28, 63 }
   0xf   : > { %s569_s24 = sshll.u32 (!%p142_p9), %s162_s17, 8  ;;  %s609_s26 = sshll.u32 (!%p142_p9), %s774_s16, 8 }
  0x10   : > { %s896_s25 = scalar_lea.vmem (!%p142_p9), [#allocation2], %s569_s24  ;;  %s499_s29 = scalar_lea.hbm (!%p142_p9), %s997_s3, %s609_s26 }
  0x11   : > { %s500_s16 = sshll.u32 (!%p142_p9), %s896_s25, 4  ;;  %s502_s30 = sshll.u32 (!%p142_p9), %s499_s29, 4  ;;  %s501_s16 = int_to_ptr.vmem [resolvable:$true] %s500_s16  ;;  %s503_s30 = int_to_ptr.hbm [resolvable:$true] %s502_s30 }
  0x12   : > { %s488_s4 = scalar_lea.sflag (!%p142_p9), [#allocation3], %s162_s17  ;;  %s681_s5 = sshra.s32 (!%p142_p9), %s503_s30, 4  ;;  %s682_s5 = int_to_ptr.hbm [resolvable:$true] %s681_s5 }
  0x13   : > { %v208_v0 = vld [vmem:[%s995_s1 + $0x20] sm:$0xff]  ;;  %v207_v1 = vld [vmem:[%s995_s1 + $0x18] sm:$0xff]  ;;  %v206_v2 = vld [vmem:[%s995_s1 + $0x10] sm:$0xff]  ;;  %s1005_s28 = smov (!%p166_p10, %s570_s28), 63  ;;  %vm213_vm0 = vcmask 326656   ;;  %s687_s9 = scalar_lea.hbm %s997_s3, 512 }
  0x14   : > { %611 = vmatpush.msra.mxu2 %v208_v0  ;;  %612 = vmatpush.msra.mxu3 %v208_v0  ;;  %v205_v3 = vld [vmem:[%s995_s1 + $0x8] sm:$0xff]  ;;  %s571_s6 = sshll.u32 %s1005_s28, 3  ;;  %v204_v4 = vld [vmem:[%s995_s1] sm:$0xff]  ;;  %p688_p0 = scmp.lt.s32.totalorder %s682_s5, %s997_s3 }
  0x15   : > { %321 = vmatpush.msra.mxu0 %v208_v0  ;;  %610 = vmatpush.msra.mxu1 %v208_v0  ;;  %s820_s11 = scalar_lea.vmem %s994_s0, %s571_s6  ;;  %v890_v37 = vld [vmem:[%s996_s2] ss:$0 sm:$0xff]  ;;  %s683_s6 = scalar_lea.hbm %s682_s5, 256 }
  0x16   : > { %614 = vmatpush.msra.mxu2 %v207_v1  ;;  %615 = vmatpush.msra.mxu3 %v207_v1  ;;  %v188_v5 = vld [vmem:[%s820_s11 + $0x80] sm:$0xff]  ;;  %v189_v9 = vld [vmem:[%s820_s11 + $0x88] sm:$0xff]  ;;  %v190_v13 = vld [vmem:[%s820_s11 + $0x90] sm:$0xff]  ;;  %p684_p11 = scmp.ne.s32.totalorder %s682_s5, %s683_s6  ;;  %p689_p1 = scmp.lt.s32.totalorder %s687_s9, %s683_s6 }
  0x17   : > { %322 = vmatpush.msra.mxu0 %v207_v1  ;;  %613 = vmatpush.msra.mxu1 %v207_v1  ;;  %v196_v6 = vld [vmem:[%s820_s11 + $0xc0] sm:$0xff]  ;;  %v197_v10 = vld [vmem:[%s820_s11 + $0xc8] sm:$0xff]  ;;  %v198_v14 = vld [vmem:[%s820_s11 + $0xd0] sm:$0xff] }
  0x18   : > { %617 = vmatpush.msra.mxu2 %v206_v2  ;;  %618 = vmatpush.msra.mxu3 %v206_v2  ;;  %v172_v7 = vld [vmem:[%s820_s11] sm:$0xff]  ;;  %v173_v11 = vld [vmem:[%s820_s11 + $0x8] sm:$0xff]  ;;  %v174_v15 = vld [vmem:[%s820_s11 + $0x10] sm:$0xff]  ;;  %p685_p12 = pnand %p684_p11, %p791_p5  ;;  %p690_p2 = por %p689_p1, %p688_p0 }
  0x19   : > { %323 = vmatpush.msra.mxu0 %v206_v2  ;;  %616 = vmatpush.msra.mxu1 %v206_v2  ;;  %v180_v8 = vld [vmem:[%s820_s11 + $0x40] sm:$0xff]  ;;  %v181_v12 = vld [vmem:[%s820_s11 + $0x48] sm:$0xff]  ;;  %v182_v16 = vld [vmem:[%s820_s11 + $0x50] sm:$0xff] }
  0x1a   : > { %620 = vmatpush.msra.mxu2 %v205_v3  ;;  %621 = vmatpush.msra.mxu3 %v205_v3  ;;  %v191_v17 = vld [vmem:[%s820_s11 + $0x98] sm:$0xff]  ;;  %v192_v21 = vld [vmem:[%s820_s11 + $0xa0] sm:$0xff]  ;;  %v193_v25 = vld [vmem:[%s820_s11 + $0xa8] sm:$0xff]  ;;  %p686_p13 = pneg %p685_p12 }
  0x1b   : > { %324 = vmatpush.msra.mxu0 %v205_v3  ;;  %619 = vmatpush.msra.mxu1 %v205_v3  ;;  %v199_v18 = vld [vmem:[%s820_s11 + $0xd8] sm:$0xff]  ;;  %v200_v22 = vld [vmem:[%s820_s11 + $0xe0] sm:$0xff]  ;;  %v201_v26 = vld [vmem:[%s820_s11 + $0xe8] sm:$0xff] }
  0x1c   : > { %623 = vmatpush.msra.mxu2 %v204_v4  ;;  %624 = vmatpush.msra.mxu3 %v204_v4  ;;  %v175_v19 = vld [vmem:[%s820_s11 + $0x18] sm:$0xff]  ;;  %v176_v23 = vld [vmem:[%s820_s11 + $0x20] sm:$0xff]  ;;  %v177_v27 = vld [vmem:[%s820_s11 + $0x28] sm:$0xff]  ;;  %p691_p3 = pnand %p690_p2, %p686_p13 }
  0x1d   : > { %588 = vmatmul.msk.f32.vlgmr.msra.gmra.mxu2 %vm213_vm0, %v188_v5  ;;  %596 = vmatmul.msk.f32.vlgmr.msra.gmra.mxu3 %vm213_vm0, %v196_v6  ;;  %v183_v20 = vld [vmem:[%s820_s11 + $0x58] sm:$0xff]  ;;  %v184_v24 = vld [vmem:[%s820_s11 + $0x60] sm:$0xff]  ;;  %v185_v28 = vld [vmem:[%s820_s11 + $0x68] sm:$0xff] }
  0x1e   : > { %325 = vmatpush.msra.mxu0 %v204_v4  ;;  %622 = vmatpush.msra.mxu1 %v204_v4  ;;  %v194_v29 = vld [vmem:[%s820_s11 + $0xb0] sm:$0xff]  ;;  %v195_v33 = vld [vmem:[%s820_s11 + $0xb8] sm:$0xff] }
  0x1f   : > { %572 = vmatmul.msk.f32.vlgmr.msra.gmra.mxu0 %vm213_vm0, %v172_v7  ;;  %580 = vmatmul.msk.f32.vlgmr.msra.gmra.mxu1 %vm213_vm0, %v180_v8  ;;  %v202_v30 = vld [vmem:[%s820_s11 + $0xf0] sm:$0xff]  ;;  %v203_v34 = vld [vmem:[%s820_s11 + $0xf8] sm:$0xff] }
  0x20   : > { %v178_v31 = vld [vmem:[%s820_s11 + $0x30] sm:$0xff]  ;;  %v179_v35 = vld [vmem:[%s820_s11 + $0x38] sm:$0xff] }
  0x21   : > { %v186_v32 = vld [vmem:[%s820_s11 + $0x70] sm:$0xff]  ;;  %v187_v36 = vld [vmem:[%s820_s11 + $0x78] sm:$0xff] }
  0x25   : > { %589 = vmatmul.msk.f32.gmra.mxu2 %vm213_vm0, %v189_v9  ;;  %597 = vmatmul.msk.f32.gmra.mxu3 %vm213_vm0, %v197_v10 }
  0x27   : > { %573 = vmatmul.msk.f32.gmra.mxu0 %vm213_vm0, %v173_v11  ;;  %581 = vmatmul.msk.f32.gmra.mxu1 %vm213_vm0, %v181_v12 }
  0x2d   : > { %590 = vmatmul.msk.f32.gmra.mxu2 %vm213_vm0, %v190_v13  ;;  %598 = vmatmul.msk.f32.gmra.mxu3 %vm213_vm0, %v198_v14 }
  0x2f   : > { %574 = vmatmul.msk.f32.gmra.mxu0 %vm213_vm0, %v174_v15  ;;  %582 = vmatmul.msk.f32.gmra.mxu1 %vm213_vm0, %v182_v16 }
  0x35   : > { %591 = vmatmul.msk.f32.gmra.mxu2 %vm213_vm0, %v191_v17  ;;  %599 = vmatmul.msk.f32.gmra.mxu3 %vm213_vm0, %v199_v18 }
  0x37   : > { %575 = vmatmul.msk.f32.gmra.mxu0 %vm213_vm0, %v175_v19  ;;  %583 = vmatmul.msk.f32.gmra.mxu1 %vm213_vm0, %v183_v20 }
  0x3d   : > { %592 = vmatmul.msk.f32.gmra.mxu2 %vm213_vm0, %v192_v21  ;;  %600 = vmatmul.msk.f32.gmra.mxu3 %vm213_vm0, %v200_v22 }
  0x3f   : > { %576 = vmatmul.msk.f32.gmra.mxu0 %vm213_vm0, %v176_v23  ;;  %584 = vmatmul.msk.f32.gmra.mxu1 %vm213_vm0, %v184_v24 }
  0x45   : > { %593 = vmatmul.msk.f32.gmra.mxu2 %vm213_vm0, %v193_v25  ;;  %601 = vmatmul.msk.f32.gmra.mxu3 %vm213_vm0, %v201_v26 }
  0x47   : > { %577 = vmatmul.msk.f32.gmra.mxu0 %vm213_vm0, %v177_v27  ;;  %585 = vmatmul.msk.f32.gmra.mxu1 %vm213_vm0, %v185_v28 }
  0x4d   : > { %594 = vmatmul.msk.f32.gmra.mxu2 %vm213_vm0, %v194_v29  ;;  %602 = vmatmul.msk.f32.gmra.mxu3 %vm213_vm0, %v202_v30 }
  0x4f   : > { %578 = vmatmul.msk.f32.gmra.mxu0 %vm213_vm0, %v178_v31  ;;  %586 = vmatmul.msk.f32.gmra.mxu1 %vm213_vm0, %v186_v32 }
  0x55   : > { %595 = vmatmul.msk.f32.gmra.mxu2 %vm213_vm0, %v195_v33  ;;  %603 = vmatmul.msk.f32.gmra.mxu3 %vm213_vm0, %v203_v34 }
  0x57   : > { %579 = vmatmul.msk.f32.gmra.mxu0 %vm213_vm0, %v179_v35  ;;  %587 = vmatmul.msk.f32.gmra.mxu1 %vm213_vm0, %v187_v36 }
  0x9c   : > { %v327_v38 = vpop.f32.mrf.mxu0  ;;  %v351_v39 = vpop.f32.mrf.mxu1 }
  0x9d   : > { %v328_v40 = vadd.f32 %v890_v37, %v327_v38  ;;  %v352_v41 = vadd.f32 %v890_v37, %v351_v39 }
  0x9f   : > { %v423_v42 = vmax.f32 %v328_v40, 0.0  ;;  %v431_v43 = vmax.f32 %v352_v41, 0.0 }
  0xa0   : > { %v375_v44 = vpop.f32.mrf.mxu2  ;;  %v399_v45 = vpop.f32.mrf.mxu3 }
  0xa1   : > { %455 = vst [vmem:[%s896_s25] sm:$0xff] %v423_v42  ;;  %v376_v46 = vadd.f32 %v890_v37, %v375_v44  ;;  %v400_v47 = vadd.f32 %v890_v37, %v399_v45 }
  0xa2   : > { %463 = vst [vmem:[%s896_s25 + $0x40] sm:$0xff] %v431_v43 }
  0xa3   : > { %v439_v48 = vmax.f32 %v376_v46, 0.0  ;;  %v447_v49 = vmax.f32 %v400_v47, 0.0 }
  0xa4   : > { %v330_v50 = vpop.f32.mrf.mxu0  ;;  %v354_v51 = vpop.f32.mrf.mxu1 }
  0xa5   : > { %471 = vst [vmem:[%s896_s25 + $0x80] sm:$0xff] %v439_v48  ;;  %v331_v52 = vadd.f32 %v890_v37, %v330_v50  ;;  %v355_v53 = vadd.f32 %v890_v37, %v354_v51 }
  0xa6   : > { %479 = vst [vmem:[%s896_s25 + $0xc0] sm:$0xff] %v447_v49 }
  0xa7   : > { %v424_v54 = vmax.f32 %v331_v52, 0.0  ;;  %v432_v55 = vmax.f32 %v355_v53, 0.0 }
  0xa8   : > { %v378_v56 = vpop.f32.mrf.mxu2  ;;  %v402_v57 = vpop.f32.mrf.mxu3 }
  0xa9   : > { %456 = vst [vmem:[%s896_s25 + $0x8] sm:$0xff] %v424_v54  ;;  %v379_v58 = vadd.f32 %v890_v37, %v378_v56  ;;  %v403_v59 = vadd.f32 %v890_v37, %v402_v57 }
  0xaa   : > { %464 = vst [vmem:[%s896_s25 + $0x48] sm:$0xff] %v432_v55 }
  0xab   : > { %v440_v60 = vmax.f32 %v379_v58, 0.0  ;;  %v448_v61 = vmax.f32 %v403_v59, 0.0 }
  0xac   : > { %v333_v62 = vpop.f32.mrf.mxu0  ;;  %v357_v63 = vpop.f32.mrf.mxu1 }
  0xad   : > { %472 = vst [vmem:[%s896_s25 + $0x88] sm:$0xff] %v440_v60  ;;  %v334_v0 = vadd.f32 %v890_v37, %v333_v62  ;;  %v358_v1 = vadd.f32 %v890_v37, %v357_v63 }
  0xae   : > { %480 = vst [vmem:[%s896_s25 + $0xc8] sm:$0xff] %v448_v61 }
  0xaf   : > { %v425_v2 = vmax.f32 %v334_v0, 0.0  ;;  %v433_v3 = vmax.f32 %v358_v1, 0.0 }
  0xb0   : > { %v381_v4 = vpop.f32.mrf.mxu2  ;;  %v405_v5 = vpop.f32.mrf.mxu3 }
  0xb1   : > { %457 = vst [vmem:[%s896_s25 + $0x10] sm:$0xff] %v425_v2  ;;  %v382_v6 = vadd.f32 %v890_v37, %v381_v4  ;;  %v406_v7 = vadd.f32 %v890_v37, %v405_v5 }
  0xb2   : > { %465 = vst [vmem:[%s896_s25 + $0x50] sm:$0xff] %v433_v3 }
  0xb3   : > { %v441_v8 = vmax.f32 %v382_v6, 0.0  ;;  %v449_v9 = vmax.f32 %v406_v7, 0.0 }
  0xb4   : > { %v336_v10 = vpop.f32.mrf.mxu0  ;;  %v360_v11 = vpop.f32.mrf.mxu1 }
  0xb5   : > { %473 = vst [vmem:[%s896_s25 + $0x90] sm:$0xff] %v441_v8  ;;  %v337_v12 = vadd.f32 %v890_v37, %v336_v10  ;;  %v361_v13 = vadd.f32 %v890_v37, %v360_v11 }
  0xb6   : > { %481 = vst [vmem:[%s896_s25 + $0xd0] sm:$0xff] %v449_v9 }
  0xb7   : > { %v426_v14 = vmax.f32 %v337_v12, 0.0  ;;  %v434_v15 = vmax.f32 %v361_v13, 0.0 }
  0xb8   : > { %v384_v16 = vpop.f32.mrf.mxu2  ;;  %v408_v17 = vpop.f32.mrf.mxu3 }
  0xb9   : > { %458 = vst [vmem:[%s896_s25 + $0x18] sm:$0xff] %v426_v14  ;;  %v385_v18 = vadd.f32 %v890_v37, %v384_v16  ;;  %v409_v19 = vadd.f32 %v890_v37, %v408_v17 }
  0xba   : > { %466 = vst [vmem:[%s896_s25 + $0x58] sm:$0xff] %v434_v15 }
  0xbb   : > { %v442_v20 = vmax.f32 %v385_v18, 0.0  ;;  %v450_v21 = vmax.f32 %v409_v19, 0.0 }
  0xbc   : > { %v339_v22 = vpop.f32.mrf.mxu0  ;;  %v363_v23 = vpop.f32.mrf.mxu1 }
  0xbd   : > { %474 = vst [vmem:[%s896_s25 + $0x98] sm:$0xff] %v442_v20  ;;  %v340_v24 = vadd.f32 %v890_v37, %v339_v22  ;;  %v364_v25 = vadd.f32 %v890_v37, %v363_v23 }
  0xbe   : > { %482 = vst [vmem:[%s896_s25 + $0xd8] sm:$0xff] %v450_v21 }
  0xbf   : > { %v427_v26 = vmax.f32 %v340_v24, 0.0  ;;  %v435_v27 = vmax.f32 %v364_v25, 0.0 }
  0xc0   : > { %v387_v28 = vpop.f32.mrf.mxu2  ;;  %v411_v29 = vpop.f32.mrf.mxu3 }
  0xc1   : > { %459 = vst [vmem:[%s896_s25 + $0x20] sm:$0xff] %v427_v26  ;;  %v388_v30 = vadd.f32 %v890_v37, %v387_v28  ;;  %v412_v31 = vadd.f32 %v890_v37, %v411_v29 }
  0xc2   : > { %467 = vst [vmem:[%s896_s25 + $0x60] sm:$0xff] %v435_v27 }
  0xc3   : > { %v443_v32 = vmax.f32 %v388_v30, 0.0  ;;  %v451_v33 = vmax.f32 %v412_v31, 0.0 }
  0xc4   : > { %v342_v34 = vpop.f32.mrf.mxu0  ;;  %v366_v35 = vpop.f32.mrf.mxu1 }
  0xc5   : > { %475 = vst [vmem:[%s896_s25 + $0xa0] sm:$0xff] %v443_v32  ;;  %v343_v36 = vadd.f32 %v890_v37, %v342_v34  ;;  %v367_v38 = vadd.f32 %v890_v37, %v366_v35 }
  0xc6   : > { %483 = vst [vmem:[%s896_s25 + $0xe0] sm:$0xff] %v451_v33 }
  0xc7   : > { %v428_v39 = vmax.f32 %v343_v36, 0.0  ;;  %v436_v40 = vmax.f32 %v367_v38, 0.0 }
  0xc8   : > { %v390_v41 = vpop.f32.mrf.mxu2  ;;  %v414_v42 = vpop.f32.mrf.mxu3 }
  0xc9   : > { %460 = vst [vmem:[%s896_s25 + $0x28] sm:$0xff] %v428_v39  ;;  %v391_v43 = vadd.f32 %v890_v37, %v390_v41  ;;  %v415_v44 = vadd.f32 %v890_v37, %v414_v42 }
  0xca   : > { %468 = vst [vmem:[%s896_s25 + $0x68] sm:$0xff] %v436_v40 }
  0xcb   : > { %v444_v45 = vmax.f32 %v391_v43, 0.0  ;;  %v452_v46 = vmax.f32 %v415_v44, 0.0 }
  0xcc   : > { %v345_v47 = vpop.f32.mrf.mxu0  ;;  %v369_v48 = vpop.f32.mrf.mxu1 }
  0xcd   : > { %476 = vst [vmem:[%s896_s25 + $0xa8] sm:$0xff] %v444_v45  ;;  %v346_v49 = vadd.f32 %v890_v37, %v345_v47  ;;  %v370_v50 = vadd.f32 %v890_v37, %v369_v48 }
  0xce   : > { %484 = vst [vmem:[%s896_s25 + $0xe8] sm:$0xff] %v452_v46 }
  0xcf   : > { %v429_v51 = vmax.f32 %v346_v49, 0.0  ;;  %v437_v52 = vmax.f32 %v370_v50, 0.0 }
  0xd0   : > { %v393_v53 = vpop.f32.mrf.mxu2  ;;  %v417_v54 = vpop.f32.mrf.mxu3 }
  0xd1   : > { %461 = vst [vmem:[%s896_s25 + $0x30] sm:$0xff] %v429_v51  ;;  %v394_v55 = vadd.f32 %v890_v37, %v393_v53  ;;  %v418_v56 = vadd.f32 %v890_v37, %v417_v54 }
  0xd2   : > { %469 = vst [vmem:[%s896_s25 + $0x70] sm:$0xff] %v437_v52 }
  0xd3   : > { %v445_v57 = vmax.f32 %v394_v55, 0.0  ;;  %v453_v58 = vmax.f32 %v418_v56, 0.0 }
  0xd4   : > { %v348_v59 = vpop.f32.mrf.mxu0  ;;  %v372_v60 = vpop.f32.mrf.mxu1 }
  0xd5   : > { %477 = vst [vmem:[%s896_s25 + $0xb0] sm:$0xff] %v445_v57  ;;  %v349_v61 = vadd.f32 %v890_v37, %v348_v59  ;;  %v373_v62 = vadd.f32 %v890_v37, %v372_v60 }
  0xd6   : > { %485 = vst [vmem:[%s896_s25 + $0xf0] sm:$0xff] %v453_v58 }
  0xd7   : > { %v430_v63 = vmax.f32 %v349_v61, 0.0  ;;  %v438_v0 = vmax.f32 %v373_v62, 0.0 }
  0xd8   : > { %v396_v1 = vpop.f32.mrf.mxu2  ;;  %v420_v2 = vpop.f32.mrf.mxu3 }
  0xd9   : > { %462 = vst [vmem:[%s896_s25 + $0x38] sm:$0xff] %v430_v63  ;;  %v397_v3 = vadd.f32 %v890_v37, %v396_v1  ;;  %v421_v4 = vadd.f32 %v890_v37, %v420_v2 }
  0xda   : > { %470 = vst [vmem:[%s896_s25 + $0x78] sm:$0xff] %v438_v0 }
  0xdb   : > { %v446_v5 = vmax.f32 %v397_v3, 0.0  ;;  %v454_v6 = vmax.f32 %v421_v4, 0.0 }
  0xdd   : > { %478 = vst [vmem:[%s896_s25 + $0xb8] sm:$0xff] %v446_v5 }
  0xde   : > { %486 = vst [vmem:[%s896_s25 + $0xf8] sm:$0xff] %v454_v6 }
  0xdf   : > { %694 = shalt.err (!%p691_p3)
}
  0xe0   : > { %s731_s17 = smov 128   ;;  %s732_s19 = smov 8  }
  0xe1   : > { %625 = dma.vmem_to_hbm [thread:$0]  (%p791_p5), %s501_s16, 4096, %s503_s30, %s488_s4, %s731_s17, %s731_s17, %s732_s19  }
  0xe2 PF: > { %p631_p4 = scmp.ge.s32.totalorder %s729_s15, 2  ;;  %s517_s20 = sand.u32 1, %s717_s12  }
  0xe3   : > { %s518_s24 = scalar_lea.sflag [#allocation3], %s517_s20 }
  0xe4   : > { %p628_p7 = pnand %p631_p4, %p795_p6 }
  0xe6   : > { %p629_p8 = pneg %p628_p7 }
  0xe8   : > { %712 = dma.done.wait (%p629_p8), %s518_s24, 4096  }
  0xe9   : > { %714 = vsyncadd (%p629_p8), %s518_s24, 4294963200  ;;  %p13_p9 = scmp.ge.s32.totalorder %s778_s18, 4   ;;  %s1000_s12 = smov %s721_s13 }
  0xea   : > { %s1001_s13 = smov %s725_s14  ;;  %s1002_s14 = smov %s789_s21 }
  0xeb   : > { %s1003_s15 = smov %s778_s18  ;;  %15 = sbr.rel (!%p13_p9) target bundleno = 3 (0x3), region = 67 }
  0xf0   :  { %524 = vsyncpa [#allocation3], 1 }
  0xf1   :  { %526 = vsyncpa [#allocation3 + $0x1], 1 }

</bundles_post_ra>
